<compile_context>
chip_gen: v7x
topology: tpu7x:2x2x1
jax: 0.10.0
libtpu: 0.0.40
codegen_flags: <defaults>
</compile_context>

<pallas_src>
import functools

import jax
import jax.numpy as jnp
from jax.experimental import pallas as pl
from jax.experimental.pallas import tpu as pltpu

_NUM_PARTS = 2  # per-core partial reductions (v7x has 2 TCs; harmless on 1-TC chips)


def _mce_kernel(logits_ref, targets_ref, sum_ref, cnt_ref,
                cls_iota, acc_sum, acc_cnt,
                *, n_rows, tile_rows, tiles_per_part):
    c = pl.program_id(0)   # part / core index
    i = pl.program_id(1)   # row-tile index within this part

    @pl.when(i == 0)
    def _():
        acc_sum[...] = jnp.zeros_like(acc_sum)
        acc_cnt[...] = jnp.zeros_like(acc_cnt)
        # Hoisted class-index iota: generated once per part, reused every step.
        cls_iota[...] = jax.lax.broadcasted_iota(jnp.int32, cls_iota.shape, 1)

    # Stream logits in native dtype; upcast in-register for the math.
    logits = logits_ref[...].astype(jnp.float32)   # (TN, C)
    tgt = targets_ref[...]                         # (TN, 1) int32

    # Numerically-stable log-sum-exp per row.
    m = jnp.max(logits, axis=-1, keepdims=True)
    lse = m + jnp.log(jnp.sum(jnp.exp(logits - m), axis=-1, keepdims=True))

    # Logit at the target class via one-hot select (VPU-friendly, no gather).
    # (1, C) iota broadcasts along sublanes, (TN, 1) target broadcasts along lanes.
    one_hot = cls_iota[...] == tgt                 # (TN, C) bool
    tgt_logit = jnp.sum(jnp.where(one_hot, logits, 0.0), axis=-1, keepdims=True)

    # Valid rows: target != ignore_index(0) AND the row actually exists (no wrapper pad;
    # tail-block contents may be garbage, so use a select rather than multiply-by-zero).
    row = jax.lax.broadcasted_iota(jnp.int32, tgt.shape, 0)
    row_global = (c * tiles_per_part + i) * tile_rows + row
    valid = jnp.logical_and(tgt != 0, row_global < n_rows)

    acc_sum[...] += jnp.where(valid, lse - tgt_logit, 0.0)
    acc_cnt[...] += valid.astype(jnp.float32)

    @pl.when(i == pl.num_programs(1) - 1)
    def _():
        sum_ref[...] = jnp.sum(acc_sum[...], keepdims=True).reshape(1, 1, 1)
        cnt_ref[...] = jnp.sum(acc_cnt[...], keepdims=True).reshape(1, 1, 1)


@functools.partial(jax.jit, static_argnames=("num_classes",))
def masked_cross_entropy_loss(inputs, targets, *, num_classes):
    """Pallas equivalent of MaskedCrossEntropyLoss.forward.

    inputs : (batch, window, num_classes) float logits (f32 or bf16)
    targets: (batch, window) int indices; 0 == padding / ignore_index
    returns: scalar float32 loss (mean over non-padding positions)
    """
    B, W, C = inputs.shape
    assert C == num_classes
    N = B * W

    logits2d = jnp.reshape(inputs, (N, C))            # keep native dtype on the wire
    tgt2d = jnp.reshape(targets, (N, 1)).astype(jnp.int32)

    # ---- VMEM-budget-aware row tile: ~2 MiB of logits per block, multiple of 8. ----
    itemsize = jnp.dtype(inputs.dtype).itemsize
    target_block_bytes = 2 << 20
    TN = (target_block_bytes // max(1, C * itemsize)) // 8 * 8
    TN = max(8, min(int(TN), 4096))
    n_rows_rounded = ((N + 7) // 8) * 8
    TN = min(TN, max(8, n_rows_rounded))               # don't oversize tiny problems

    n_tiles = pl.cdiv(N, TN)
    tiles_per_part = pl.cdiv(n_tiles, _NUM_PARTS)

    def _row_block_map(c, i):
        # Clamp logical tile index into range; out-of-range logical tiles are fully
        # masked inside the kernel via the row_global < N check (no double counting:
        # masking uses the *logical* row index, not the clamped physical one).
        return (jnp.minimum(c * tiles_per_part + i, n_tiles - 1), 0)

    # ---- Explicit VMEM budget (double-buffered inputs + f32 temporaries + slack). ----
    blk_logits = TN * C * itemsize
    blk_tgt = TN * 4
    f32_temps = 3 * TN * C * 4                          # upcast / exp / select live copies
    scratch = 8 * C * 4 + 2 * TN * 4                    # (1,C) iota (padded) + accumulators
    vmem_needed = 2 * (blk_logits + blk_tgt) + f32_temps + scratch + (1 << 20)
    vmem_limit = int(min(max(2 * vmem_needed, 16 << 20), 48 << 20))

    part_sum, part_cnt = pl.pallas_call(
        functools.partial(_mce_kernel, n_rows=N, tile_rows=TN,
                          tiles_per_part=tiles_per_part),
        out_shape=(
            jax.ShapeDtypeStruct((_NUM_PARTS, 1, 1), jnp.float32),
            jax.ShapeDtypeStruct((_NUM_PARTS, 1, 1), jnp.float32),
        ),
        grid_spec=pltpu.PrefetchScalarGridSpec(
            num_scalar_prefetch=0,
            grid=(_NUM_PARTS, tiles_per_part),
            in_specs=[
                pl.BlockSpec((TN, C), _row_block_map),
                pl.BlockSpec((TN, 1), _row_block_map),
            ],
            out_specs=[
                pl.BlockSpec((1, 1, 1), lambda c, i: (c, 0, 0)),
                pl.BlockSpec((1, 1, 1), lambda c, i: (c, 0, 0)),
            ],
            scratch_shapes=[
                pltpu.VMEM((1, C), jnp.int32),      # hoisted class-index iota
                pltpu.VMEM((TN, 1), jnp.float32),   # per-row loss accumulator
                pltpu.VMEM((TN, 1), jnp.float32),   # per-row valid-count accumulator
            ],
        ),
        compiler_params=pltpu.CompilerParams(
            dimension_semantics=("parallel", "arbitrary"),
            vmem_limit_bytes=vmem_limit,
        ),
    )(logits2d, tgt2d)

    # reduction='mean' over non-ignored targets (0/0 -> nan, same as PyTorch).
    loss_sum = jnp.sum(part_sum)
    valid_cnt = jnp.sum(part_cnt)
    return (loss_sum / valid_cnt).astype(jnp.float32)


def _reference(inputs, targets, num_classes):
    """Pure-JAX reference for validation."""
    N = inputs.shape[0] * inputs.shape[1]
    logits = jnp.reshape(inputs, (N, num_classes)).astype(jnp.float32)
    tgt = jnp.reshape(targets, (N,)).astype(jnp.int32)
    lse = jax.nn.logsumexp(logits, axis=-1)
    tgt_logit = jnp.take_along_axis(logits, tgt[:, None], axis=-1)[:, 0]
    nll = lse - tgt_logit
    mask = (tgt != 0).astype(jnp.float32)
    return jnp.sum(nll * mask) / jnp.sum(mask)


if __name__ == "__main__":
    key = jax.random.PRNGKey(0)
    k1, k2 = jax.random.split(key)

    batch_size, window_size, num_classes = 2, 8, 32
    inputs = jax.random.normal(k1, (batch_size, window_size, num_classes),
                               dtype=jnp.float32)
    targets = jax.random.randint(k2, (batch_size, window_size), 0, num_classes,
                                 dtype=jnp.int32)

    loss = masked_cross_entropy_loss(inputs, targets, num_classes=num_classes)
    loss = jax.block_until_ready(loss)

    ref = _reference(inputs, targets, num_classes)
    assert jnp.allclose(loss, ref, rtol=1e-5, atol=1e-5), (loss, ref)

    print("KERNEL_OK")
</pallas_src>

<mosaic_0001>
module attributes {stable_mosaic.version = 11 : i64} {
  func.func @_mce_kernel(%arg0: i32, %arg1: i32, %arg2: memref<16x32xf32, #tpu.memory_space<vmem>>, %arg3: memref<16x1xi32, #tpu.memory_space<vmem>>, %arg4: memref<1x1x1xf32, #tpu.memory_space<vmem>>, %arg5: memref<1x1x1xf32, #tpu.memory_space<vmem>>, %arg6: memref<1x32xi32, #tpu.memory_space<vmem>>, %arg7: memref<16x1xf32, #tpu.memory_space<vmem>>, %arg8: memref<16x1xf32, #tpu.memory_space<vmem>>) attributes {dimension_semantics = [#tpu.dimension_semantics<parallel>, #tpu.dimension_semantics<arbitrary>], iteration_bounds = array<i64: 2, 1>, scalar_prefetch = 0 : i64, scratch_operands = 3 : i64, tpu.core_type = #tpu.core_type<tc>, window_params = [{transform_indices = @transform_0, window_bounds = array<i64: 16, 32>}, {transform_indices = @transform_1, window_bounds = array<i64: 16, 1>}, {transform_indices = @transform_2, window_bounds = array<i64: 1, 1, 1>}, {transform_indices = @transform_3, window_bounds = array<i64: 1, 1, 1>}]} {
    %c0_i32 = arith.constant 0 : i32
    %0 = arith.cmpi eq, %arg1, %c0_i32 : i32
    %1 = arith.extui %0 : i1 to i32
    %c0_i32_0 = arith.constant 0 : i32
    %2 = arith.cmpi ne, %1, %c0_i32_0 : i32
    scf.if %2 {
      %cst_22 = arith.constant 0.000000e+00 : f32
      %47 = vector.broadcast %cst_22 : f32 to vector<16x1xf32>
      %c0_23 = arith.constant 0 : index
      %c0_24 = arith.constant 0 : index
      %48 = vector.load %arg7[%c0_23, %c0_24] : memref<16x1xf32, #tpu.memory_space<vmem>>, vector<16x1xf32>
      tpu.vector_store %arg7[%c0_23, %c0_24], %47 {strides = array<i32>} : memref<16x1xf32, #tpu.memory_space<vmem>>, vector<16x1xf32>,
      %cst_25 = arith.constant 0.000000e+00 : f32
      %49 = vector.broadcast %cst_25 : f32 to vector<16x1xf32>
      %c0_26 = arith.constant 0 : index
      %c0_27 = arith.constant 0 : index
      %50 = vector.load %arg8[%c0_26, %c0_27] : memref<16x1xf32, #tpu.memory_space<vmem>>, vector<16x1xf32>
      tpu.vector_store %arg8[%c0_26, %c0_27], %49 {strides = array<i32>} : memref<16x1xf32, #tpu.memory_space<vmem>>, vector<16x1xf32>,
      %51 = tpu.iota {dimensions = array<i32: 1>} : vector<1x32xi32>
      %c0_28 = arith.constant 0 : index
      %c0_29 = arith.constant 0 : index
      %52 = vector.load %arg6[%c0_28, %c0_29] : memref<1x32xi32, #tpu.memory_space<vmem>>, vector<1x32xi32>
      tpu.vector_store %arg6[%c0_28, %c0_29], %51 {strides = array<i32>} : memref<1x32xi32, #tpu.memory_space<vmem>>, vector<1x32xi32>,
    } else {
    }
    %c0 = arith.constant 0 : index
    %c0_1 = arith.constant 0 : index
    %3 = vector.load %arg2[%c0, %c0_1] : memref<16x32xf32, #tpu.memory_space<vmem>>, vector<16x32xf32>
    %c0_2 = arith.constant 0 : index
    %c0_3 = arith.constant 0 : index
    %4 = vector.load %arg3[%c0_2, %c0_3] : memref<16x1xi32, #tpu.memory_space<vmem>>, vector<16x1xi32>
    %cst = arith.constant dense<0xFF800000> : vector<16xf32>
    %5 = vector.multi_reduction <maximumf>, %3, %cst [1] : vector<16x32xf32> to vector<16xf32>
    %6 = vector.shape_cast %5 : vector<16xf32> to vector<16x1xf32>
    %7 = vector.broadcast %6 : vector<16x1xf32> to vector<16x32xf32>
    %8 = arith.subf %3, %7 : vector<16x32xf32>
    %9 = math.exp %8 : vector<16x32xf32>
    %cst_4 = arith.constant dense<0.000000e+00> : vector<16xf32>
    %10 = vector.multi_reduction <add>, %9, %cst_4 [1] : vector<16x32xf32> to vector<16xf32>
    %11 = vector.shape_cast %10 : vector<16xf32> to vector<16x1xf32>
    %12 = math.log %11 : vector<16x1xf32>
    %13 = arith.addf %6, %12 : vector<16x1xf32>
    %c0_5 = arith.constant 0 : index
    %c0_6 = arith.constant 0 : index
    %14 = vector.load %arg6[%c0_5, %c0_6] : memref<1x32xi32, #tpu.memory_space<vmem>>, vector<1x32xi32>
    %15 = vector.broadcast %14 : vector<1x32xi32> to vector<16x32xi32>
    %16 = vector.broadcast %4 : vector<16x1xi32> to vector<16x32xi32>
    %17 = arith.cmpi eq, %15, %16 : vector<16x32xi32>
    %cst_7 = arith.constant 0.000000e+00 : f32
    %18 = vector.broadcast %cst_7 : f32 to vector<16x32xf32>
    %19 = arith.select %17, %3, %18 : vector<16x32xi1>, vector<16x32xf32>
    %cst_8 = arith.constant dense<0.000000e+00> : vector<16xf32>
    %20 = vector.multi_reduction <add>, %19, %cst_8 [1] : vector<16x32xf32> to vector<16xf32>
    %21 = vector.shape_cast %20 : vector<16xf32> to vector<16x1xf32>
    %22 = tpu.iota {dimensions = array<i32: 0>} : vector<16x1xi32>
    %c1_i32 = arith.constant 1 : i32
    %23 = arith.muli %arg0, %c1_i32 : i32
    %24 = arith.addi %23, %arg1 : i32
    %c16_i32 = arith.constant 16 : i32
    %25 = arith.muli %24, %c16_i32 : i32
    %26 = vector.broadcast %25 : i32 to vector<16x1xi32>
    %27 = arith.addi %26, %22 : vector<16x1xi32>
    %c0_i32_9 = arith.constant 0 : i32
    %28 = vector.broadcast %c0_i32_9 : i32 to vector<16x1xi32>
    %29 = arith.cmpi ne, %4, %28 : vector<16x1xi32>
    %c16_i32_10 = arith.constant 16 : i32
    %30 = vector.broadcast %c16_i32_10 : i32 to vector<16x1xi32>
    %31 = arith.cmpi slt, %27, %30 : vector<16x1xi32>
    %32 = arith.andi %29, %31 : vector<16x1xi1>
    %c0_11 = arith.constant 0 : index
    %c0_12 = arith.constant 0 : index
    %33 = vector.load %arg7[%c0_11, %c0_12] : memref<16x1xf32, #tpu.memory_space<vmem>>, vector<16x1xf32>
    %34 = arith.subf %13, %21 : vector<16x1xf32>
    %cst_13 = arith.constant 0.000000e+00 : f32
    %35 = vector.broadcast %cst_13 : f32 to vector<16x1xf32>
    %36 = arith.select %32, %34, %35 : vector<16x1xi1>, vector<16x1xf32>
    %37 = arith.addf %33, %36 : vector<16x1xf32>
    %c0_14 = arith.constant 0 : index
    %c0_15 = arith.constant 0 : index
    %38 = vector.load %arg7[%c0_14, %c0_15] : memref<16x1xf32, #tpu.memory_space<vmem>>, vector<16x1xf32>
    tpu.vector_store %arg7[%c0_14, %c0_15], %37 {strides = array<i32>} : memref<16x1xf32, #tpu.memory_space<vmem>>, vector<16x1xf32>,
    %c0_16 = arith.constant 0 : index
    %c0_17 = arith.constant 0 : index
    %39 = vector.load %arg8[%c0_16, %c0_17] : memref<16x1xf32, #tpu.memory_space<vmem>>, vector<16x1xf32>
    %40 = arith.extui %32 : vector<16x1xi1> to vector<16x1xi32>
    %41 = arith.sitofp %40 : vector<16x1xi32> to vector<16x1xf32>
    %42 = arith.addf %39, %41 : vector<16x1xf32>
    %c0_18 = arith.constant 0 : index
    %c0_19 = arith.constant 0 : index
    %43 = vector.load %arg8[%c0_18, %c0_19] : memref<16x1xf32, #tpu.memory_space<vmem>>, vector<16x1xf32>
    tpu.vector_store %arg8[%c0_18, %c0_19], %42 {strides = array<i32>} : memref<16x1xf32, #tpu.memory_space<vmem>>, vector<16x1xf32>,
    %c0_i32_20 = arith.constant 0 : i32
    %44 = arith.cmpi eq, %arg1, %c0_i32_20 : i32
    %45 = arith.extui %44 : i1 to i32
    %c0_i32_21 = arith.constant 0 : i32
    %46 = arith.cmpi ne, %45, %c0_i32_21 : i32
    scf.if %46 {
      %c0_22 = arith.constant 0 : index
      %c0_23 = arith.constant 0 : index
      %47 = vector.load %arg7[%c0_22, %c0_23] : memref<16x1xf32, #tpu.memory_space<vmem>>, vector<16x1xf32>
      %48 = vector.shape_cast %47 : vector<16x1xf32> to vector<1x16x1xf32>
      %cst_24 = arith.constant dense<0.000000e+00> : vector<1xf32>
      %49 = vector.multi_reduction <add>, %48, %cst_24 [1, 2] : vector<1x16x1xf32> to vector<1xf32>
      %50 = vector.shape_cast %49 : vector<1xf32> to vector<1x1x1xf32>
      %51 = vector.extract %50[0, 0, 0] : f32 from vector<1x1x1xf32>
      %52 = vector.broadcast %51 : f32 to vector<1x1xf32>
      %53 = vector.shape_cast %52 : vector<1x1xf32> to vector<1x1x1xf32>
      %c0_25 = arith.constant 0 : index
      %c0_26 = arith.constant 0 : index
      %c0_27 = arith.constant 0 : index
      %54 = vector.load %arg4[%c0_25, %c0_26, %c0_27] : memref<1x1x1xf32, #tpu.memory_space<vmem>>, vector<1x1x1xf32>
      tpu.vector_store %arg4[%c0_25, %c0_26, %c0_27], %53 {strides = array<i32>} : memref<1x1x1xf32, #tpu.memory_space<vmem>>, vector<1x1x1xf32>,
      %c0_28 = arith.constant 0 : index
      %c0_29 = arith.constant 0 : index
      %55 = vector.load %arg8[%c0_28, %c0_29] : memref<16x1xf32, #tpu.memory_space<vmem>>, vector<16x1xf32>
      %56 = vector.shape_cast %55 : vector<16x1xf32> to vector<1x16x1xf32>
      %cst_30 = arith.constant dense<0.000000e+00> : vector<1xf32>
      %57 = vector.multi_reduction <add>, %56, %cst_30 [1, 2] : vector<1x16x1xf32> to vector<1xf32>
      %58 = vector.shape_cast %57 : vector<1xf32> to vector<1x1x1xf32>
      %59 = vector.extract %58[0, 0, 0] : f32 from vector<1x1x1xf32>
      %60 = vector.broadcast %59 : f32 to vector<1x1xf32>
      %61 = vector.shape_cast %60 : vector<1x1xf32> to vector<1x1x1xf32>
      %c0_31 = arith.constant 0 : index
      %c0_32 = arith.constant 0 : index
      %c0_33 = arith.constant 0 : index
      %62 = vector.load %arg5[%c0_31, %c0_32, %c0_33] : memref<1x1x1xf32, #tpu.memory_space<vmem>>, vector<1x1x1xf32>
      tpu.vector_store %arg5[%c0_31, %c0_32, %c0_33], %61 {strides = array<i32>} : memref<1x1x1xf32, #tpu.memory_space<vmem>>, vector<1x1x1xf32>,
    } else {
    }
    return
  }
  func.func @transform_0(%arg0: i32, %arg1: i32) -> (i32, i32) {
    %c1_i32 = arith.constant 1 : i32
    %0 = arith.muli %arg0, %c1_i32 : i32
    %1 = arith.addi %0, %arg1 : i32
    %c0_i32 = arith.constant 0 : i32
    %2 = arith.minsi %1, %c0_i32 : i32
    %c0_i32_0 = arith.constant 0 : i32
    %c0_i32_1 = arith.constant 0 : i32
    return %2, %c0_i32_0 : i32, i32
  }
  func.func @transform_1(%arg0: i32, %arg1: i32) -> (i32, i32) {
    %c1_i32 = arith.constant 1 : i32
    %0 = arith.muli %arg0, %c1_i32 : i32
    %1 = arith.addi %0, %arg1 : i32
    %c0_i32 = arith.constant 0 : i32
    %2 = arith.minsi %1, %c0_i32 : i32
    %c0_i32_0 = arith.constant 0 : i32
    %c0_i32_1 = arith.constant 0 : i32
    return %2, %c0_i32_0 : i32, i32
  }
  func.func @transform_2(%arg0: i32, %arg1: i32) -> (i32, i32, i32) {
    %c0_i32 = arith.constant 0 : i32
    %c0_i32_0 = arith.constant 0 : i32
    %c0_i32_1 = arith.constant 0 : i32
    return %arg0, %c0_i32, %c0_i32_0 : i32, i32, i32
  }
  func.func @transform_3(%arg0: i32, %arg1: i32) -> (i32, i32, i32) {
    %c0_i32 = arith.constant 0 : i32
    %c0_i32_0 = arith.constant 0 : i32
    %c0_i32_1 = arith.constant 0 : i32
    return %arg0, %c0_i32, %c0_i32_0 : i32, i32, i32
  }
}

</mosaic_0001>

<bundles_post_ra>
// kernel: masked_cross_entropy_loss.1
= control target key start
LH: loop header
LB: loop body
LE: loop exit
PB: predicated region body
PF: predicated region fallthrough
CT: control target
= control target key end

     0   :  { %s581_s12 = smov 0   ;;  %s583_s13 = smov 0   ;;  %s667_s0 = inlined_call_operand.vmem [shape: f32[16,32], index: 0, kind: input, shape index: {}]   ;;  %s668_s1 = inlined_call_operand.vmem [shape: s32[16,1], index: 1, kind: input, shape index: {}]   ;;  %s669_s2 = inlined_call_operand.vmem [shape: f32[2,1,1], index: 2, kind: output, shape index: {0}]   ;;  %s670_s3 = inlined_call_operand.vmem [shape: f32[2,1,1], index: 3, kind: output, shape index: {1}]  }
   0x1   :  { %s585_s14 = smov 0  }
   0x2 LB: > { %s26_s15 = sadd.s32 1, %s553_s13  ;;  %p484_p0 = scmp.ge.s32.totalorder %s557_s14, 1  ;;  %s557_s14 = sphi %s585_s14, %s14_s14   ;;  %s553_s13 = sphi %s583_s13, %s676_s13   ;;  %s549_s12 = sphi %s581_s12, %s675_s12  }
   0x3   : > { %p28_p1 = scmp.ge.s32.totalorder %s26_s15, 2  ;;  %p188_p2 = scmp.lt.s32.totalorder %s557_s14, 3 }
   0x5   : > { %s678_s15 = smov (%p28_p1, %s26_s15), 0  ;;  %p189_p3 = pnand %p484_p0, %p188_p2 }
   0x6   : > { %p225_p4 = scmp.lt.s32.totalorder (!%p189_p3), %s549_s12, 0  ;;  %vm258_vm0 = vcmask (!%p189_p3), 7168   ;;  %s490_s16 = sshll.u32 (!%p189_p3), %s549_s12, 4  ;;  %v559_v0 = vmov (!%p189_p3), 0   ;;  %v560_v1 = vmov (!%p189_p3), 0.0   ;;  %v263_v2 = vlaneseq (!%p189_p3) }
   0x7   : > { %192 = sbr.rel (%p189_p3) target bundleno = 569 (0x239), region = 28  ;;  %525 = vset.pattern.permute.xlu1 (!%p189_p3), %v559_v0  ;;  %261 = vst.msk [vmem:[#allocation4] sm:$0xff] (!%p189_p3), %vm258_vm0, %v560_v1  ;;  %259 = vst.msk [vmem:[#allocation3] sm:$0xff] (!%p189_p3), %vm258_vm0, %v560_v1  ;;  %526 = vset.pattern.permute.xlu0 (!%p189_p3), %v559_v0  ;;  %vm265_vm1 = vcmask (!%p189_p3), 253952   ;;  %v322_v5 = vstv (!%p189_p3), %s490_s16  ;;  %vm271_vm2 = vcmask (!%p189_p3), 261120   ;;  %p248_p6 = scmp.lt.s32.totalorder (!%p189_p3), %s549_s12, 1 }
   0x8   : > { %260 = vst.msk [vmem:[#allocation3 + $0x8] sm:$0xff] (!%p189_p3), %vm258_vm0, %v560_v1  ;;  %262 = vst.msk [vmem:[#allocation4 + $0x8] sm:$0xff] (!%p189_p3), %vm258_vm0, %v560_v1  ;;  %v264_v3 = vand.u32 (!%p189_p3), 127, %v263_v2  ;;  %v318_v4 = vshrl.u32 (!%p189_p3), %v263_v2, 7  ;;  %vm370_vm11 = vcmask (!%p189_p3), 0  }
   0xa   : > { %266 = vst.msk [vmem:[#allocation2] sm:$0x1] (!%p189_p3), %vm265_vm1, %v264_v3  ;;  %v323_v6 = vadd.s32 (!%p189_p3), %v322_v5, %v318_v4  ;;  %v319_v34 = vadd.s32 (!%p189_p3), 8, %v318_v4 }
   0xc   : > { %vm327_vm3 = vcmp.lt.s32.totalorder (!%p189_p3), %v323_v6, 16  ;;  %v324_v35 = vadd.s32 (!%p189_p3), %v322_v5, %v319_v34 }
   0xe   : > { %s226_s17 = scalar_select %p225_p4, %s549_s12, 0  ;;  %v342_v11 = vld [vmem:[#allocation4] sm:$0xff]  ;;  %vm328_vm9 = vcmp.lt.s32.totalorder %v324_v35, 16  ;;  %v331_v48 = vld [vmem:[#allocation3] sm:$0xff] }
   0xf   : > { %v343_v37 = vld [vmem:[#allocation4 + $0x8] sm:$0xff]  ;;  %v332_v54 = vld [vmem:[#allocation3 + $0x8] sm:$0xff]  ;;  %s682_s12 = smov (!%p248_p6, %s549_s12), 1 }
  0x10   : > { %s485_s18 = sshll.u32 %s226_s17, 1  ;;  %s250_s28 = scalar_lea.vmem %s669_s2, %s682_s12 }
  0x11   : > { %p228_p5 = scmp.lt.s32.totalorder %s485_s18, 1  ;;  %v489_v24 = vld [vmem:[#allocation2] ss:$0 sm:$0xff]  ;;  %s253_s5 = scalar_lea.vmem %s670_s3, %s682_s12 }
  0x13   : > { %s680_s18 = smov (!%p228_p5, %s485_s18), 1 }
  0x14   : > { %s486_s19 = sshll.u32 %s680_s18, 3 }
  0x15   : > { %s231_s22 = scalar_lea.vmem %s667_s0, %s486_s19  ;;  %s243_s25 = scalar_lea.vmem %s668_s1, %s486_s19 }
  0x16   : > { %v267_v7 = vld [vmem:[%s231_s22] sm:$0xff]  ;;  %v268_v8 = vld [vmem:[%s231_s22 + $0x8] sm:$0xff] }
  0x17   : > { %v269_v9 = vld [vmem:[%s243_s25] sm:$0xff]  ;;  %v272_v10 = vsel %vm271_vm2, %v267_v7, -inf  ;;  %v270_v13 = vld [vmem:[%s243_s25 + $0x8] sm:$0xff]  ;;  %v275_v14 = vsel %vm271_vm2, %v268_v8, -inf }
  0x18   : > { %302 = vperm.xlu1 %525, %v269_v9   ;;  %vm325_vm4 = vcmp.ne.s32.totalorder %v269_v9, 0  ;;  %273 = vmax.xlane.f32.xlu0 %v272_v10  ;;  %vm326_vm8 = vcmp.ne.s32.totalorder %v270_v13, 0 }
  0x19   : > { %vm619_vm5 = vmand %vm325_vm4, %vm327_vm3 }
  0x1a   : > { %v491_v15 = vsel %vm619_vm5, 1.0, %v560_v1  ;;  %vm632_vm10 = vmand %vm326_vm8, %vm328_vm9 }
  0x1b   : > { %v348_v16 = vadd.f32 %v491_v15, %v342_v11  ;;  %v492_v38 = vsel %vm632_vm10, 1.0, %v560_v1 }
  0x1c   : > { %305 = vperm.xlu1 %525, %v270_v13   ;;  %276 = vmax.xlane.f32.xlu0 %v275_v14  ;;  %v349_v39 = vadd.f32 %v492_v38, %v343_v37 }
  0x1d   : > { %350 = vst.msk [vmem:[#allocation4] sm:$0xff] %vm258_vm0, %v348_v16 }
  0x1e   : > { %351 = vst.msk [vmem:[#allocation4 + $0x8] sm:$0xff] %vm258_vm0, %v349_v39 }
  0x24   : > { %v372_v59 = vld [vmem:[#allocation4] sm:$0xff] }
  0x25   : > { %v373_v60 = vld [vmem:[#allocation4 + $0x8] sm:$0xff]  ;;  %v374_v0 = vsel %vm258_vm0, %v372_v59, 0.0 }
  0x26   : > { %v375_v1 = vsel %vm258_vm0, %v373_v60, 0.0 }
  0x27   : > { %v376_v3 = vadd.f32 %v375_v1, %v374_v0 }
  0x97   : > { %v303_v23 = vpop.permute.xlu1 %302 }
  0x98   : > { %vm307_vm6 = vcmp.eq.s32.totalorder %v489_v24, %v303_v23 }
  0x99   : > { %v309_v27 = vsel %vm307_vm6, %v267_v7, 0.0 }
  0x9a   : > { %v311_v29 = vsel %vm271_vm2, %v309_v27, 0.0 }
  0x9b   : > { %v306_v25 = vpop.permute.xlu1 %305 }
  0x9c   : > { %vm308_vm7 = vcmp.eq.s32.totalorder %v489_v24, %v306_v25 }
  0x9d   : > { %v310_v31 = vsel %vm308_vm7, %v268_v8, 0.0 }
  0x9e   : > { %v314_v33 = vsel %vm271_vm2, %v310_v31, 0.0 }
  0xa5   : > { %v274_v17 = vpop.xlane.xlu0 %273 }
  0xa6   : > { %v278_v18 = vsub.f32 %v267_v7, %v274_v17 }
  0xa8   : > { %v280_v19 = vmul.f32 1.442695, %v278_v18 }
  0xa9   : > { %v277_v20 = vpop.xlane.xlu0 %276 }
  0xaa   : > { %527 = vpow2.f32 %v280_v19  ;;  %v279_v21 = vsub.f32 %v268_v8, %v277_v20 }
  0xac   : > { %v282_v22 = vmul.f32 1.442695, %v279_v21 }
  0xae   : > { %529 = vpow2.f32 %v282_v22 }
  0xb4   : > { %v528_v26 = vpop.eup %527 }
  0xb5   : > { %v284_v28 = vsel %vm271_vm2, %v528_v26, 0.0 }
  0xb6   : > { %285 = vadd.xlane.f32.xlu0 %v284_v28 }
  0xb8   : > { %v530_v30 = vpop.eup %529 }
  0xb9   : > { %v287_v32 = vsel %vm271_vm2, %v530_v30, 0.0 }
  0xba   : > { %288 = vadd.xlane.f32.xlu1 %v287_v32  ;;  %312 = vadd.xlane.f32.xlu0 %v311_v29 }
  0xbe   : > { %315 = vadd.xlane.f32.xlu0 %v314_v33 }
 0x143   : > { %v286_v40 = vpop.xlane.xlu0 %285 }
 0x144   : > { %531 = vlog2.f32 %v286_v40 }
 0x147   : > { %v289_v41 = vpop.xlane.xlu1 %288  ;;  %v313_v44 = vpop.xlane.xlu0 %312 }
 0x148   : > { %533 = vlog2.f32 %v289_v41 }
 0x14b   : > { %v316_v53 = vpop.xlane.xlu0 %315 }
 0x14e   : > { %v532_v42 = vpop.eup %531 }
 0x14f   : > { %v291_v43 = vmul.f32 0.6931472, %v532_v42 }
 0x151   : > { %v294_v45 = vadd.f32 %v291_v43, %v274_v17 }
 0x152   : > { %v534_v46 = vpop.eup %533 }
 0x153   : > { %v293_v47 = vmul.f32 0.6931472, %v534_v46  ;;  %v333_v49 = vsub.f32 %v294_v45, %v313_v44 }
 0x155   : > { %v335_v50 = vsel %vm619_vm5, %v333_v49, 0.0  ;;  %v295_v51 = vadd.f32 %v293_v47, %v277_v20 }
 0x156   : > { %v337_v52 = vadd.f32 %v335_v50, %v331_v48 }
 0x157   : > { %v334_v55 = vsub.f32 %v295_v51, %v316_v53 }
 0x158   : > { %340 = vst.msk [vmem:[#allocation3] sm:$0xff] %vm258_vm0, %v337_v52 }
 0x159   : > { %v336_v56 = vsel %vm632_vm10, %v334_v55, 0.0 }
 0x15a   : > { %v338_v57 = vadd.f32 %v336_v56, %v332_v54 }
 0x15c   : > { %341 = vst.msk [vmem:[#allocation3 + $0x8] sm:$0xff] %vm258_vm0, %v338_v57 }
 0x15f   : > { %v355_v58 = vld [vmem:[#allocation3] sm:$0xff] }
 0x160   : > { %v357_v62 = vsel %vm258_vm0, %v355_v58, 0.0 }
 0x163   : > { %v356_v61 = vld [vmem:[#allocation3 + $0x8] sm:$0xff] }
 0x164   : > { %v358_v63 = vsel %vm258_vm0, %v356_v61, 0.0 }
 0x165   : > { %v359_v2 = vadd.f32 %v358_v63, %v357_v62 }
 0x167   : > { %360 = vadd.xlane.f32.xlu0 %v359_v2 }
 0x16b   : > { %377 = vadd.xlane.f32.xlu0 %v376_v3 }
 0x1f4   : > { %v361_v4 = vpop.xlane.xlu0 %360 }
 0x1f5   : > { %v362_v5 = vrot.slane %v361_v4, 4 }
 0x1f7   : > { %v363_v6 = vadd.f32 %v362_v5, %v361_v4 }
 0x1f8   : > { %v378_v7 = vpop.xlane.xlu0 %377 }
 0x1f9   : > { %v364_v8 = vrot.slane %v363_v6, 2  ;;  %v379_v9 = vrot.slane %v378_v7, 4 }
 0x1fb   : > { %v380_v10 = vadd.f32 %v379_v9, %v378_v7  ;;  %v365_v11 = vadd.f32 %v364_v8, %v363_v6 }
 0x1fd   : > { %v381_v12 = vrot.slane %v380_v10, 2  ;;  %v366_v13 = vrot.slane %v365_v11, 1 }
 0x1ff   : > { %v382_v14 = vadd.f32 %v381_v12, %v380_v10  ;;  %v367_v15 = vadd.f32 %v366_v13, %v365_v11 }
 0x201   : > { %495 = vpush %v367_v15  ;;  %v383_v16 = vrot.slane %v382_v14, 1 }
 0x203   : > { %v384_v17 = vadd.f32 %v383_v16, %v382_v14 }
 0x205   : > { %497 = vpush %v384_v17 }
 0x232   : > { %s496_s29 = spop %495 }
 0x233   : > { %v369_v18 = vstv %s496_s29 }
 0x234   : > { %371 = vst.msk [vmem:[%s250_s28] sm:$0x1] %vm370_vm11, %v369_v18 }
 0x236   : > { %s498_s6 = spop %497 }
 0x237   : > { %v386_v19 = vstv %s498_s6 }
 0x238   : > { %387 = vst.msk [vmem:[%s253_s5] sm:$0x1] %vm370_vm11, %v386_v19 }
 0x239 PF: > { %s14_s14 = sadd.s32 1, %s557_s14   ;;  %s675_s12 = smov %s553_s13 }
 0x23a   : > { %p11_p7 = scmp.ge.s32.totalorder %s14_s14, 4   ;;  %s676_s13 = smov %s678_s15 }
 0x23c   :  { %13 = sbr.rel (!%p11_p7) target bundleno = 2 (0x2), region = 81 }

</bundles_post_ra>
